<compile_context>
chip_gen: v5e
topology: v5e:2x2
jax: 0.10.0
libtpu: 0.0.40
codegen_flags: <defaults>
</compile_context>

<pallas_src>
import functools

import jax
import jax.numpy as jnp
from jax.experimental import pallas as pl
from jax.experimental.pallas import tpu as pltpu

_LANE = 128
_SUBLANE = 8


def _round_up(x, m):
    return (x + m - 1) // m * m


def _vae_kernel(x_ref, eps_ref, w_enc_ref, b_enc_ref, w_mv_ref, b_mv_ref,
                w_dec_ref, b_dec_ref, recon_ref, mu_ref, scale_ref):
    cdt = w_enc_ref.dtype  # matmul operand dtype (f32 or bf16)

    # encoder: tanh(x @ W_enc + b_enc)   (f32 MXU accumulation, f32 elementwise)
    h = jnp.tanh(
        jnp.dot(x_ref[...], w_enc_ref[...], preferred_element_type=jnp.float32)
        + b_enc_ref[...])

    # fused mean / log-variance heads: one (hidden, 2*hidden) matmul
    mv = (jnp.dot(h.astype(cdt), w_mv_ref[...],
                  preferred_element_type=jnp.float32)
          + b_mv_ref[...])
    hp = mv.shape[-1] // 2            # multiple of 128 -> no tile-crossing slice
    mu = mv[:, :hp]
    log_var = mv[:, hp:]

    std = jnp.exp(log_var * 0.5)
    z = mu + eps_ref[...] * std       # eps ~ Uniform[0,1), torch.rand_like

    # decoder
    recon = (jnp.dot(z.astype(cdt), w_dec_ref[...],
                     preferred_element_type=jnp.float32)
             + b_dec_ref[...])

    recon_ref[...] = recon.astype(recon_ref.dtype)
    mu_ref[...] = mu.astype(mu_ref.dtype)
    # Normal(loc=mu, scale=exp(log_var)) exactly as the PyTorch module builds it;
    # the extra exp rides in the otherwise-idle EUP slot.
    scale_ref[...] = jnp.exp(log_var).astype(scale_ref.dtype)


def prepare_params(params, compute_dtype=jnp.bfloat16):
    """One-time host-side weight padding + mu/var head fusion.

    Call this once at parameter-load time and reuse the result for every
    forward; the per-call jitted path never touches the weights again.
    Weights are stored [in_features, out_features] (transposed from
    nn.Linear's [out, in]) and zero-padded to multiples of 128 lanes; the zero
    pads are exact (invariant relied upon by the kernel's padded lanes).
    """
    w_enc, b_enc, w_mu, b_mu, w_var, b_var, w_dec, b_dec = params
    in_dim, hidden = w_enc.shape
    out_dim = w_dec.shape[1]
    in_p = _round_up(in_dim, _LANE)
    hid_p = _round_up(hidden, _LANE)
    out_p = _round_up(out_dim, _LANE)
    f32 = jnp.float32

    def pad2(a, rows, cols, dt):
        a = jnp.asarray(a)
        if a.ndim == 1:
            a = a.reshape(1, -1)
        return jnp.pad(a, ((0, rows - a.shape[0]),
                           (0, cols - a.shape[1]))).astype(dt)

    padded = (
        pad2(w_enc, in_p, hid_p, compute_dtype),                    # W_enc
        pad2(b_enc, 1, hid_p, f32),                                 # b_enc
        jnp.concatenate([pad2(w_mu, hid_p, hid_p, compute_dtype),   # [W_mu|W_var]
                         pad2(w_var, hid_p, hid_p, compute_dtype)], axis=1),
        jnp.concatenate([pad2(b_mu, 1, hid_p, f32),                 # [b_mu|b_var]
                         pad2(b_var, 1, hid_p, f32)], axis=1),
        pad2(w_dec, hid_p, out_p, compute_dtype),                   # W_dec
        pad2(b_dec, 1, out_p, f32),                                 # b_dec
    )
    dims = (int(in_dim), int(hidden), int(out_dim))
    return padded, dims


@functools.partial(jax.jit,
                   static_argnames=("dims", "block_b", "out_dtype", "trim"))
def vae_space_forward(x, padded_params, eps=None, key=None, *, dims,
                      block_b=None, out_dtype=jnp.float32, trim=True):
    """Pallas forward of vae_space.

    Returns (z_reconstruct, (mu, scale)) with scale = exp(log_var), matching
    Independent(Normal(loc=mu, scale=exp(log_var)), 1) in the PyTorch module.
    `padded_params`/`dims` come from prepare_params().  Supply either `eps`
    (Uniform[0,1), shape [B, hidden]) or a PRNG `key` to draw it
    (torch.rand_like equivalent).  Set trim=False to keep lane/batch-padded
    outputs (avoids the post-kernel slice for padded-layout consumers).
    """
    w_enc_p, b_enc_p, w_mv_p, b_mv_p, w_dec_p, b_dec_p = padded_params
    in_dim, hidden, out_dim = dims
    B = x.shape[0]
    compute_dtype = w_enc_p.dtype
    f32 = jnp.float32

    in_p, hid_p = w_enc_p.shape
    out_p = w_dec_p.shape[1]

    if eps is None:
        # TODO(synk): on real TPU generate eps in-kernel via pltpu.prng_seed /
        # prng_random_bits (drops this HBM input stream); the stateful HW PRNG
        # has no interpret-mode lowering, so it stays host-side here.
        eps = jax.random.uniform(key, (B, hidden), f32)

    if block_b is None:
        # >=2 grid steps when B allows it, so the "parallel" axis can split
        # across v7x's two TensorCores; capped at 256 rows per tile.
        block_b = min(256, max(_SUBLANE, _round_up(-(-B // 2), _SUBLANE)))
    block_b = max(_SUBLANE, _round_up(block_b, _SUBLANE))
    B_p = _round_up(B, block_b)
    grid = (B_p // block_b,)

    def pad_rows(a, cols, dt):
        return jnp.pad(a, ((0, B_p - a.shape[0]),
                           (0, cols - a.shape[1]))).astype(dt)

    x_p = pad_rows(x, in_p, compute_dtype)
    eps_p = pad_rows(eps, hid_p, f32)

    def bmap(i):
        return (i, 0)

    def wmap(i):
        return (0, 0)

    # Grid-invariant weights: single-buffered (double-buffering them is pure
    # VMEM waste since their block index never changes).
    resident = dict(pipeline_mode=pl.Buffered(1))
    in_specs = [
        pl.BlockSpec((block_b, in_p), bmap),                       # x tile
        pl.BlockSpec((block_b, hid_p), bmap),                      # eps tile
        pl.BlockSpec((in_p, hid_p), wmap, **resident),             # W_enc
        pl.BlockSpec((1, hid_p), wmap, **resident),                # b_enc
        pl.BlockSpec((hid_p, 2 * hid_p), wmap, **resident),        # [W_mu|W_var]
        pl.BlockSpec((1, 2 * hid_p), wmap, **resident),            # [b_mu|b_var]
        pl.BlockSpec((hid_p, out_p), wmap, **resident),            # W_dec
        pl.BlockSpec((1, out_p), wmap, **resident),                # b_dec
    ]
    out_specs = [
        pl.BlockSpec((block_b, out_p), bmap),   # z_reconstruct
        pl.BlockSpec((block_b, hid_p), bmap),   # mu
        pl.BlockSpec((block_b, hid_p), bmap),   # scale = exp(log_var)
    ]
    out_shape = (
        jax.ShapeDtypeStruct((B_p, out_p), out_dtype),
        jax.ShapeDtypeStruct((B_p, hid_p), out_dtype),
        jax.ShapeDtypeStruct((B_p, hid_p), out_dtype),
    )

    cdt_size = jnp.dtype(compute_dtype).itemsize
    out_size = jnp.dtype(out_dtype).itemsize
    w_elems = in_p * hid_p + 2 * hid_p * hid_p + hid_p * out_p
    w_bytes = w_elems * cdt_size + (3 * hid_p + out_p) * 4
    # resident weights (single buffer) + double-buffered activation tiles.
    act_bytes = 2 * block_b * (in_p * cdt_size + hid_p * 4
                               + (out_p + 2 * hid_p) * out_size)
    vmem_limit = int(min(w_bytes + act_bytes + (4 << 20), 128 << 20))

    cost = pl.CostEstimate(
        flops=2 * B_p * w_elems,
        transcendentals=3 * B_p * hid_p,               # tanh + 2x exp
        bytes_accessed=int(B_p * in_p * cdt_size
                           + B_p * hid_p * 4
                           + w_bytes
                           + B_p * (out_p + 2 * hid_p) * out_size))

    recon_p, mu_p, scale_p = pl.pallas_call(
        _vae_kernel,
        out_shape=out_shape,
        grid_spec=pltpu.PrefetchScalarGridSpec(
            num_scalar_prefetch=0,
            grid=grid,
            in_specs=in_specs,
            out_specs=out_specs),
        compiler_params=pltpu.CompilerParams(
            dimension_semantics=("parallel",),
            vmem_limit_bytes=vmem_limit),
        cost_estimate=cost,
    )(x_p, eps_p, w_enc_p, b_enc_p, w_mv_p, b_mv_p, w_dec_p, b_dec_p)

    if trim:
        return (recon_p[:B, :out_dim],
                (mu_p[:B, :hidden], scale_p[:B, :hidden]))
    return recon_p, (mu_p, scale_p)


def init_params(key, in_dim, hidden, out_dim):
    """PyTorch-style uniform(+-1/sqrt(fan_in)) init; weights as [in, out]."""
    def linear(k, fan_in, fan_out):
        kw, kb = jax.random.split(k)
        bound = 1.0 / jnp.sqrt(fan_in)
        w = jax.random.uniform(kw, (fan_in, fan_out), jnp.float32, -bound, bound)
        b = jax.random.uniform(kb, (1, fan_out), jnp.float32, -bound, bound)
        return w, b

    k1, k2, k3, k4 = jax.random.split(key, 4)
    w_enc, b_enc = linear(k1, in_dim, hidden)
    w_mu, b_mu = linear(k2, hidden, hidden)
    w_var, b_var = linear(k3, hidden, hidden)
    w_dec, b_dec = linear(k4, hidden, out_dim)
    return (w_enc, b_enc, w_mu, b_mu, w_var, b_var, w_dec, b_dec)


def reference_forward(x, eps, params):
    """Pure-JAX reference of the PyTorch vae_space.forward."""
    w_enc, b_enc, w_mu, b_mu, w_var, b_var, w_dec, b_dec = params
    h = jnp.tanh(x @ w_enc + b_enc)
    mu = h @ w_mu + b_mu
    log_var = h @ w_var + b_var
    z = mu + eps * jnp.exp(log_var / 2.0)
    recon = z @ w_dec + b_dec
    return recon, (mu, jnp.exp(log_var))


if __name__ == "__main__":
    # Shapes implied by GRU4Rec.prior_net: in=id_dim, hidden=id_dim//2, out=id_dim.
    id_dim = 32
    in_dim, hidden, out_dim = id_dim, id_dim // 2, id_dim
    batch = 6  # deliberately NOT a multiple of 8 -> exercises the padding path

    key = jax.random.PRNGKey(0)
    k_x, k_eps, k_params = jax.random.split(key, 3)

    x = jax.random.normal(k_x, (batch, in_dim), jnp.float32)
    eps = jax.random.uniform(k_eps, (batch, hidden), jnp.float32)  # rand_like
    params = init_params(k_params, in_dim, hidden, out_dim)

    ref_recon, (ref_mu, ref_scale) = reference_forward(x, eps, params)

    # 1) f32 MXU operands, host-supplied eps: exact check against the reference.
    padded_f32, dims = prepare_params(params, compute_dtype=jnp.float32)
    recon, (mu, scale) = vae_space_forward(x, padded_f32, eps, dims=dims)
    jax.block_until_ready((recon, mu, scale))
    assert recon.shape == (batch, out_dim)
    assert jnp.allclose(recon, ref_recon, atol=1e-5, rtol=1e-5)
    assert jnp.allclose(mu, ref_mu, atol=1e-5, rtol=1e-5)
    assert jnp.allclose(scale, ref_scale, atol=1e-5, rtol=1e-5)

    # 2) production config: bf16 MXU operands (f32 accumulation), eps drawn
    #    from a key (torch.rand_like equivalent). mu/scale are eps-independent
    #    and must still match the reference to bf16 tolerance.
    padded_bf16, dims_b = prepare_params(params, compute_dtype=jnp.bfloat16)
    recon_b, (mu_b, scale_b) = vae_space_forward(
        x, padded_bf16, eps=None, key=k_eps, dims=dims_b)
    jax.block_until_ready((recon_b, mu_b, scale_b))
    assert recon_b.shape == (batch, out_dim)
    assert jnp.allclose(mu_b, ref_mu, atol=1e-1, rtol=1e-1)
    assert jnp.allclose(scale_b, ref_scale, atol=1e-1, rtol=1e-1)
    assert bool(jnp.all(jnp.isfinite(recon_b)))

    # 3) bf16 weights with the same eps as the reference: loose recon check.
    recon_b2, _ = vae_space_forward(x, padded_bf16, eps, dims=dims_b)
    jax.block_until_ready(recon_b2)
    assert jnp.allclose(recon_b2, ref_recon, atol=1e-1, rtol=1e-1)

    print("KERNEL_OK")
</pallas_src>

<mosaic_0001>
module attributes {stable_mosaic.version = 11 : i64} {
  func.func @_vae_kernel(%arg0: i32, %arg1: memref<8x128xf32, #tpu.memory_space<vmem>>, %arg2: memref<8x128xf32, #tpu.memory_space<vmem>>, %arg3: memref<128x128xf32, #tpu.memory_space<vmem>>, %arg4: memref<1x128xf32, #tpu.memory_space<vmem>>, %arg5: memref<128x256xf32, #tpu.memory_space<vmem>>, %arg6: memref<1x256xf32, #tpu.memory_space<vmem>>, %arg7: memref<128x128xf32, #tpu.memory_space<vmem>>, %arg8: memref<1x128xf32, #tpu.memory_space<vmem>>, %arg9: memref<8x128xf32, #tpu.memory_space<vmem>>, %arg10: memref<8x128xf32, #tpu.memory_space<vmem>>, %arg11: memref<8x128xf32, #tpu.memory_space<vmem>>) attributes {dimension_semantics = [#tpu.dimension_semantics<parallel>], iteration_bounds = array<i64: 1>, scalar_prefetch = 0 : i64, scratch_operands = 0 : i64, tpu.core_type = #tpu.core_type<tc>, window_params = [{transform_indices = @transform_0, window_bounds = array<i64: 8, 128>}, {transform_indices = @transform_1, window_bounds = array<i64: 8, 128>}, {pipeline_mode = #tpu.pipeline_mode<synchronous>, transform_indices = @transform_2, window_bounds = array<i64: 128, 128>}, {pipeline_mode = #tpu.pipeline_mode<synchronous>, transform_indices = @transform_3, window_bounds = array<i64: 1, 128>}, {pipeline_mode = #tpu.pipeline_mode<synchronous>, transform_indices = @transform_4, window_bounds = array<i64: 128, 256>}, {pipeline_mode = #tpu.pipeline_mode<synchronous>, transform_indices = @transform_5, window_bounds = array<i64: 1, 256>}, {pipeline_mode = #tpu.pipeline_mode<synchronous>, transform_indices = @transform_6, window_bounds = array<i64: 128, 128>}, {pipeline_mode = #tpu.pipeline_mode<synchronous>, transform_indices = @transform_7, window_bounds = array<i64: 1, 128>}, {transform_indices = @transform_8, window_bounds = array<i64: 8, 128>}, {transform_indices = @transform_9, window_bounds = array<i64: 8, 128>}, {transform_indices = @transform_10, window_bounds = array<i64: 8, 128>}]} {
    %c0 = arith.constant 0 : index
    %c0_0 = arith.constant 0 : index
    %0 = vector.load %arg1[%c0, %c0_0] : memref<8x128xf32, #tpu.memory_space<vmem>>, vector<8x128xf32>
    %c0_1 = arith.constant 0 : index
    %c0_2 = arith.constant 0 : index
    %1 = vector.load %arg3[%c0_1, %c0_2] : memref<128x128xf32, #tpu.memory_space<vmem>>, vector<128x128xf32>
    %cst = arith.constant dense<0.000000e+00> : vector<8x128xf32>
    %2 = tpu.matmul %0, %1, %cst {dimension_numbers = #tpu.dot_dimension_numbers<[1], [0], [0], [1], [0, 0, 1, 1], [], []>} : vector<8x128xf32>, vector<128x128xf32>, vector<8x128xf32> -> vector<8x128xf32>
    %c0_3 = arith.constant 0 : index
    %c0_4 = arith.constant 0 : index
    %3 = vector.load %arg4[%c0_3, %c0_4] : memref<1x128xf32, #tpu.memory_space<vmem>>, vector<1x128xf32>
    %4 = vector.broadcast %3 : vector<1x128xf32> to vector<8x128xf32>
    %5 = arith.addf %2, %4 : vector<8x128xf32>
    %6 = math.tanh %5 : vector<8x128xf32>
    %c0_5 = arith.constant 0 : index
    %c0_6 = arith.constant 0 : index
    %7 = vector.load %arg5[%c0_5, %c0_6] : memref<128x256xf32, #tpu.memory_space<vmem>>, vector<128x256xf32>
    %cst_7 = arith.constant dense<0.000000e+00> : vector<8x256xf32>
    %8 = tpu.matmul %6, %7, %cst_7 {dimension_numbers = #tpu.dot_dimension_numbers<[1], [0], [0], [1], [0, 0, 1, 1], [], []>} : vector<8x128xf32>, vector<128x256xf32>, vector<8x256xf32> -> vector<8x256xf32>
    %c0_8 = arith.constant 0 : index
    %c0_9 = arith.constant 0 : index
    %9 = vector.load %arg6[%c0_8, %c0_9] : memref<1x256xf32, #tpu.memory_space<vmem>>, vector<1x256xf32>
    %10 = vector.broadcast %9 : vector<1x256xf32> to vector<8x256xf32>
    %11 = arith.addf %8, %10 : vector<8x256xf32>
    %12 = vector.extract_strided_slice %11 {offsets = [0, 0], sizes = [8, 128], strides = [1, 1]} : vector<8x256xf32> to vector<8x128xf32>
    %13 = vector.extract_strided_slice %11 {offsets = [0, 128], sizes = [8, 128], strides = [1, 1]} : vector<8x256xf32> to vector<8x128xf32>
    %cst_10 = arith.constant 5.000000e-01 : f32
    %14 = vector.broadcast %cst_10 : f32 to vector<8x128xf32>
    %15 = arith.mulf %13, %14 : vector<8x128xf32>
    %16 = math.exp %15 : vector<8x128xf32>
    %c0_11 = arith.constant 0 : index
    %c0_12 = arith.constant 0 : index
    %17 = vector.load %arg2[%c0_11, %c0_12] : memref<8x128xf32, #tpu.memory_space<vmem>>, vector<8x128xf32>
    %18 = arith.mulf %17, %16 : vector<8x128xf32>
    %19 = arith.addf %12, %18 : vector<8x128xf32>
    %c0_13 = arith.constant 0 : index
    %c0_14 = arith.constant 0 : index
    %20 = vector.load %arg7[%c0_13, %c0_14] : memref<128x128xf32, #tpu.memory_space<vmem>>, vector<128x128xf32>
    %cst_15 = arith.constant dense<0.000000e+00> : vector<8x128xf32>
    %21 = tpu.matmul %19, %20, %cst_15 {dimension_numbers = #tpu.dot_dimension_numbers<[1], [0], [0], [1], [0, 0, 1, 1], [], []>} : vector<8x128xf32>, vector<128x128xf32>, vector<8x128xf32> -> vector<8x128xf32>
    %c0_16 = arith.constant 0 : index
    %c0_17 = arith.constant 0 : index
    %22 = vector.load %arg8[%c0_16, %c0_17] : memref<1x128xf32, #tpu.memory_space<vmem>>, vector<1x128xf32>
    %23 = vector.broadcast %22 : vector<1x128xf32> to vector<8x128xf32>
    %24 = arith.addf %21, %23 : vector<8x128xf32>
    %c0_18 = arith.constant 0 : index
    %c0_19 = arith.constant 0 : index
    %25 = vector.load %arg9[%c0_18, %c0_19] : memref<8x128xf32, #tpu.memory_space<vmem>>, vector<8x128xf32>
    tpu.vector_store %arg9[%c0_18, %c0_19], %24 {strides = array<i32>} : memref<8x128xf32, #tpu.memory_space<vmem>>, vector<8x128xf32>,
    %c0_20 = arith.constant 0 : index
    %c0_21 = arith.constant 0 : index
    %26 = vector.load %arg10[%c0_20, %c0_21] : memref<8x128xf32, #tpu.memory_space<vmem>>, vector<8x128xf32>
    tpu.vector_store %arg10[%c0_20, %c0_21], %12 {strides = array<i32>} : memref<8x128xf32, #tpu.memory_space<vmem>>, vector<8x128xf32>,
    %27 = math.exp %13 : vector<8x128xf32>
    %c0_22 = arith.constant 0 : index
    %c0_23 = arith.constant 0 : index
    %28 = vector.load %arg11[%c0_22, %c0_23] : memref<8x128xf32, #tpu.memory_space<vmem>>, vector<8x128xf32>
    tpu.vector_store %arg11[%c0_22, %c0_23], %27 {strides = array<i32>} : memref<8x128xf32, #tpu.memory_space<vmem>>, vector<8x128xf32>,
    return
  }
  func.func @transform_0(%arg0: i32) -> (i32, i32) {
    %c0_i32 = arith.constant 0 : i32
    %c0_i32_0 = arith.constant 0 : i32
    return %arg0, %c0_i32 : i32, i32
  }
  func.func @transform_1(%arg0: i32) -> (i32, i32) {
    %c0_i32 = arith.constant 0 : i32
    %c0_i32_0 = arith.constant 0 : i32
    return %arg0, %c0_i32 : i32, i32
  }
  func.func @transform_2(%arg0: i32) -> (i32, i32) {
    %c0_i32 = arith.constant 0 : i32
    %c0_i32_0 = arith.constant 0 : i32
    %c0_i32_1 = arith.constant 0 : i32
    return %c0_i32, %c0_i32_0 : i32, i32
  }
  func.func @transform_3(%arg0: i32) -> (i32, i32) {
    %c0_i32 = arith.constant 0 : i32
    %c0_i32_0 = arith.constant 0 : i32
    %c0_i32_1 = arith.constant 0 : i32
    return %c0_i32, %c0_i32_0 : i32, i32
  }
  func.func @transform_4(%arg0: i32) -> (i32, i32) {
    %c0_i32 = arith.constant 0 : i32
    %c0_i32_0 = arith.constant 0 : i32
    %c0_i32_1 = arith.constant 0 : i32
    return %c0_i32, %c0_i32_0 : i32, i32
  }
  func.func @transform_5(%arg0: i32) -> (i32, i32) {
    %c0_i32 = arith.constant 0 : i32
    %c0_i32_0 = arith.constant 0 : i32
    %c0_i32_1 = arith.constant 0 : i32
    return %c0_i32, %c0_i32_0 : i32, i32
  }
  func.func @transform_6(%arg0: i32) -> (i32, i32) {
    %c0_i32 = arith.constant 0 : i32
    %c0_i32_0 = arith.constant 0 : i32
    %c0_i32_1 = arith.constant 0 : i32
    return %c0_i32, %c0_i32_0 : i32, i32
  }
  func.func @transform_7(%arg0: i32) -> (i32, i32) {
    %c0_i32 = arith.constant 0 : i32
    %c0_i32_0 = arith.constant 0 : i32
    %c0_i32_1 = arith.constant 0 : i32
    return %c0_i32, %c0_i32_0 : i32, i32
  }
  func.func @transform_8(%arg0: i32) -> (i32, i32) {
    %c0_i32 = arith.constant 0 : i32
    %c0_i32_0 = arith.constant 0 : i32
    return %arg0, %c0_i32 : i32, i32
  }
  func.func @transform_9(%arg0: i32) -> (i32, i32) {
    %c0_i32 = arith.constant 0 : i32
    %c0_i32_0 = arith.constant 0 : i32
    return %arg0, %c0_i32 : i32, i32
  }
  func.func @transform_10(%arg0: i32) -> (i32, i32) {
    %c0_i32 = arith.constant 0 : i32
    %c0_i32_0 = arith.constant 0 : i32
    return %arg0, %c0_i32 : i32, i32
  }
}

</mosaic_0001>

<bundles_post_ra>
// kernel: vae_space_forward.1
= control target key start
LH: loop header
LB: loop body
LE: loop exit
PB: predicated region body
PF: predicated region fallthrough
CT: control target
= control target key end

     0   :  { %16 = vsyncpa [#allocation3], 0  ;;  %s569_s0 = inlined_call_operand.vmem [shape: f32[8,128], index: 0, kind: input, shape index: {}]   ;;  %s570_s1 = inlined_call_operand.vmem [shape: f32[8,128], index: 1, kind: input, shape index: {}]   ;;  %s571_s2 = inlined_call_operand.hbm [shape: f32[128,128], index: 2, kind: input, shape index: {}]   ;;  %s572_s3 = inlined_call_operand.vmem [shape: f32[1,128], index: 3, kind: input, shape index: {}]   ;;  %s573_s4 = inlined_call_operand.hbm [shape: f32[128,256], index: 4, kind: input, shape index: {}]   ;;  %s574_s5 = inlined_call_operand.vmem [shape: f32[1,256], index: 5, kind: input, shape index: {}]   ;;  %s575_s6 = inlined_call_operand.hbm [shape: f32[128,128], index: 6, kind: input, shape index: {}]   ;;  %s576_s7 = inlined_call_operand.vmem [shape: f32[1,128], index: 7, kind: input, shape index: {}]   ;;  %s577_s8 = inlined_call_operand.hbm [shape: f32[8,128], index: 8, kind: output, shape index: {0}]   ;;  %s578_s9 = inlined_call_operand.hbm [shape: f32[8,128], index: 9, kind: output, shape index: {1}]   ;;  %s579_s10 = inlined_call_operand.hbm [shape: f32[8,128], index: 10, kind: output, shape index: {2}]  }
   0x1   :  { %17 = vsyncpa [#allocation6], 0 }
   0x2   :  { %18 = vsyncpa [#allocation4], 0  ;;  %s43_s15 = sshll.u32 %s573_s4, 4  ;;  %s44_s15 = int_to_ptr.hbm [resolvable:$true] %s43_s15 }
   0x3   :  { %19 = vsyncpa [#allocation10], 0  ;;  %s471_s16 = smov [#allocation5]   ;;  %s28_s20 = sshll.u32 %s571_s2, 4  ;;  %s29_s20 = int_to_ptr.hbm [resolvable:$true] %s28_s20 }
   0x4   :  { %s45_s17 = sshll.u32 %s471_s16, 4  ;;  %s472_s21 = smov 256   ;;  %s46_s17 = int_to_ptr.vmem [resolvable:$true] %s45_s17 }
   0x5   :  { %s473_s22 = smov 16   ;;  %s474_s23 = smov [#allocation2]  }
   0x6   :  { %51 = dma.hbm_to_vmem [thread:$0]  %s44_s15, 4096, %s46_s17, [#allocation6], %s472_s21, %s472_s21, %s473_s22  }
   0x7   :  { %s30_s24 = sshll.u32 %s474_s23, 4  ;;  %s475_s25 = smov 128   ;;  %s31_s24 = int_to_ptr.vmem [resolvable:$true] %s30_s24 }
   0x8   :  { %s476_s26 = smov 8   ;;  %s58_s28 = sshll.u32 %s575_s6, 4  ;;  %s59_s28 = int_to_ptr.hbm [resolvable:$true] %s58_s28 }
   0x9   :  { %36 = dma.hbm_to_vmem [thread:$0]  %s29_s20, 2048, %s31_s24, [#allocation3], %s475_s25, %s475_s25, %s476_s26  }
   0xa   :  { %s477_s29 = smov [#allocation7]  }
   0xb   :  { %s60_s30 = sshll.u32 %s477_s29, 4  ;;  %s61_s30 = int_to_ptr.vmem [resolvable:$true] %s60_s30 }
   0xc   :  { %66 = dma.hbm_to_vmem [thread:$0]  %s59_s28, 2048, %s61_s30, [#allocation6], %s475_s25, %s475_s25, %s476_s26  }
   0xd   :  { %463 = dma.done.wait [#allocation3], 2048  }
   0xe   :  { %464 = vsyncadd [#allocation3], 4294965248 }
   0xf   :  { %465 = dma.done.wait [#allocation6], 6144  }
  0x10   :  { %466 = vsyncadd [#allocation6], 4294961152  ;;  %v97_v0 = vld [vmem:[#allocation2 + $0x78] sm:$0xff]  ;;  %v96_v1 = vld [vmem:[#allocation2 + $0x70] sm:$0xff]  ;;  %s270_s18 = sshll.u32 %s578_s9, 4  ;;  %s479_s19 = smov [#allocation11]   ;;  %s271_s18 = int_to_ptr.hbm [resolvable:$true] %s270_s18 }
  0x11   :  { %102 = vmatpush.msra.mxu0 %v97_v0  ;;  %v95_v2 = vld [vmem:[#allocation2 + $0x68] sm:$0xff]  ;;  %v94_v3 = vld [vmem:[#allocation2 + $0x60] sm:$0xff]  ;;  %v93_v4 = vld [vmem:[#allocation2 + $0x58] sm:$0xff]  ;;  %s279_s20 = sshll.u32 %s479_s19, 4  ;;  %s480_s25 = smov [#allocation8]   ;;  %s280_s20 = int_to_ptr.vmem [resolvable:$true] %s279_s20 }
  0x12   :  { %v153_v5 = vld [vmem:[#allocation5 + $0xf0] sm:$0xff]  ;;  %v154_v6 = vld [vmem:[#allocation5 + $0xf8] sm:$0xff]  ;;  %v151_v7 = vld [vmem:[#allocation5 + $0xe0] sm:$0xff]  ;;  %s257_s26 = sshll.u32 %s480_s25, 4  ;;  %s259_s27 = sshll.u32 %s577_s8, 4  ;;  %s258_s26 = int_to_ptr.vmem [resolvable:$true] %s257_s26  ;;  %s260_s27 = int_to_ptr.hbm [resolvable:$true] %s259_s27 }
  0x13   :  { %103 = vmatpush.msra.mxu0 %v96_v1  ;;  %161 = vmatpush.msra.mxu1 %v153_v5  ;;  %v152_v8 = vld [vmem:[#allocation5 + $0xe8] sm:$0xff]  ;;  %v149_v9 = vld [vmem:[#allocation5 + $0xd0] sm:$0xff]  ;;  %v150_v11 = vld [vmem:[#allocation5 + $0xd8] sm:$0xff] }
  0x14   :  { %181 = vmatpush.msra.mxu2 %v154_v6  ;;  %v92_v10 = vld [vmem:[#allocation2 + $0x50] sm:$0xff]  ;;  %v147_v12 = vld [vmem:[#allocation5 + $0xc0] sm:$0xff]  ;;  %v91_v13 = vld [vmem:[#allocation2 + $0x48] sm:$0xff] }
  0x15   :  { %104 = vmatpush.msra.mxu0 %v95_v2  ;;  %162 = vmatpush.msra.mxu1 %v151_v7  ;;  %v148_v14 = vld [vmem:[#allocation5 + $0xc8] sm:$0xff]  ;;  %v145_v15 = vld [vmem:[#allocation5 + $0xb0] sm:$0xff]  ;;  %v90_v16 = vld [vmem:[#allocation2 + $0x40] sm:$0xff] }
  0x16   :  { %182 = vmatpush.msra.mxu2 %v152_v8  ;;  %v146_v17 = vld [vmem:[#allocation5 + $0xb8] sm:$0xff]  ;;  %v143_v18 = vld [vmem:[#allocation5 + $0xa0] sm:$0xff]  ;;  %v144_v20 = vld [vmem:[#allocation5 + $0xa8] sm:$0xff] }
  0x17   :  { %105 = vmatpush.msra.mxu0 %v94_v3  ;;  %163 = vmatpush.msra.mxu1 %v149_v9  ;;  %v89_v19 = vld [vmem:[#allocation2 + $0x38] sm:$0xff]  ;;  %v141_v21 = vld [vmem:[#allocation5 + $0x90] sm:$0xff]  ;;  %v139_v24 = vld [vmem:[#allocation5 + $0x80] sm:$0xff] }
  0x18   :  { %183 = vmatpush.msra.mxu2 %v150_v11  ;;  %v88_v22 = vld [vmem:[#allocation2 + $0x30] sm:$0xff]  ;;  %v142_v23 = vld [vmem:[#allocation5 + $0x98] sm:$0xff]  ;;  %v87_v25 = vld [vmem:[#allocation2 + $0x28] sm:$0xff] }
  0x19   :  { %106 = vmatpush.msra.mxu0 %v93_v4  ;;  %164 = vmatpush.msra.mxu1 %v147_v12  ;;  %v140_v26 = vld [vmem:[#allocation5 + $0x88] sm:$0xff]  ;;  %v137_v27 = vld [vmem:[#allocation5 + $0x70] sm:$0xff]  ;;  %v86_v28 = vld [vmem:[#allocation2 + $0x20] sm:$0xff] }
  0x1a   :  { %184 = vmatpush.msra.mxu2 %v148_v14  ;;  %v138_v29 = vld [vmem:[#allocation5 + $0x78] sm:$0xff]  ;;  %v135_v30 = vld [vmem:[#allocation5 + $0x60] sm:$0xff]  ;;  %v136_v32 = vld [vmem:[#allocation5 + $0x68] sm:$0xff] }
  0x1b   :  { %107 = vmatpush.msra.mxu0 %v92_v10  ;;  %165 = vmatpush.msra.mxu1 %v145_v15  ;;  %v85_v31 = vld [vmem:[#allocation2 + $0x18] sm:$0xff]  ;;  %v133_v33 = vld [vmem:[#allocation5 + $0x50] sm:$0xff]  ;;  %v83_v36 = vld [vmem:[#allocation2 + $0x8] sm:$0xff] }
  0x1c   :  { %185 = vmatpush.msra.mxu2 %v146_v17  ;;  %v84_v34 = vld [vmem:[#allocation2 + $0x10] sm:$0xff]  ;;  %v134_v35 = vld [vmem:[#allocation5 + $0x58] sm:$0xff]  ;;  %v82_v37 = vld [vmem:[#allocation2] sm:$0xff] }
  0x1d   :  { %108 = vmatpush.msra.mxu0 %v91_v13  ;;  %166 = vmatpush.msra.mxu1 %v143_v18  ;;  %v81_v38 = vld [vmem:[%s569_s0] sm:$0xff]  ;;  %v132_v40 = vld [vmem:[#allocation5 + $0x48] sm:$0xff]  ;;  %v129_v41 = vld [vmem:[#allocation5 + $0x30] sm:$0xff] }
  0x1e   :  { %186 = vmatpush.msra.mxu2 %v144_v20  ;;  %v131_v39 = vld [vmem:[#allocation5 + $0x40] sm:$0xff]  ;;  %v130_v42 = vld [vmem:[#allocation5 + $0x38] sm:$0xff]  ;;  %v128_v44 = vld [vmem:[#allocation5 + $0x28] sm:$0xff] }
  0x1f   :  { %109 = vmatpush.msra.mxu0 %v90_v16  ;;  %167 = vmatpush.msra.mxu1 %v141_v21  ;;  %v127_v43 = vld [vmem:[#allocation5 + $0x20] sm:$0xff]  ;;  %v125_v45 = vld [vmem:[#allocation5 + $0x10] sm:$0xff]  ;;  %v126_v46 = vld [vmem:[#allocation5 + $0x18] sm:$0xff] }
  0x20   :  { %187 = vmatpush.msra.mxu2 %v142_v23  ;;  %v123_v47 = vld [vmem:[#allocation5] sm:$0xff]  ;;  %v124_v48 = vld [vmem:[#allocation5 + $0x8] sm:$0xff]  ;;  %v222_v49 = vld [vmem:[#allocation7 + $0x78] sm:$0xff] }
  0x21   :  { %110 = vmatpush.msra.mxu0 %v89_v19  ;;  %168 = vmatpush.msra.mxu1 %v139_v24  ;;  %v221_v50 = vld [vmem:[#allocation7 + $0x70] sm:$0xff]  ;;  %v220_v51 = vld [vmem:[#allocation7 + $0x68] sm:$0xff]  ;;  %v219_v52 = vld [vmem:[#allocation7 + $0x60] sm:$0xff] }
  0x22   :  { %188 = vmatpush.msra.mxu2 %v140_v26  ;;  %227 = vmatpush.msra.mxu3 %v222_v49  ;;  %v311_v53 = vld [vmem:[%s572_s3] ss:$0 sm:$0xff]  ;;  %v218_v57 = vld [vmem:[#allocation7 + $0x58] sm:$0xff]  ;;  %v217_v58 = vld [vmem:[#allocation7 + $0x50] sm:$0xff] }
  0x23   :  { %111 = vmatpush.msra.mxu0 %v88_v22  ;;  %169 = vmatpush.msra.mxu1 %v137_v27  ;;  %v216_v59 = vld [vmem:[#allocation7 + $0x48] sm:$0xff]  ;;  %v215_v60 = vld [vmem:[#allocation7 + $0x40] sm:$0xff]  ;;  %v214_v61 = vld [vmem:[#allocation7 + $0x38] sm:$0xff] }
  0x24   :  { %189 = vmatpush.msra.mxu2 %v138_v29  ;;  %228 = vmatpush.msra.mxu3 %v221_v50  ;;  %v213_v62 = vld [vmem:[#allocation7 + $0x30] sm:$0xff]  ;;  %v212_v63 = vld [vmem:[#allocation7 + $0x28] sm:$0xff]  ;;  %v211_v0 = vld [vmem:[#allocation7 + $0x20] sm:$0xff] }
  0x25   :  { %112 = vmatpush.msra.mxu0 %v87_v25  ;;  %170 = vmatpush.msra.mxu1 %v135_v30  ;;  %v210_v1 = vld [vmem:[#allocation7 + $0x18] sm:$0xff]  ;;  %v209_v2 = vld [vmem:[#allocation7 + $0x10] sm:$0xff]  ;;  %v208_v3 = vld [vmem:[#allocation7 + $0x8] sm:$0xff] }
  0x26   :  { %190 = vmatpush.msra.mxu2 %v136_v32  ;;  %229 = vmatpush.msra.mxu3 %v220_v51  ;;  %v207_v4 = vld [vmem:[#allocation7] sm:$0xff] }
  0x27   :  { %113 = vmatpush.msra.mxu0 %v86_v28  ;;  %171 = vmatpush.msra.mxu1 %v133_v33  ;;  %v155_v5 = vld [vmem:[%s574_s5] sm:$0x3]  ;;  %s478_s5 = smov [#allocation9]  }
  0x28   :  { %191 = vmatpush.msra.mxu2 %v134_v35  ;;  %230 = vmatpush.msra.mxu3 %v219_v52  ;;  %v157_v6 = vperm.slane %v155_v5, 0  ;;  %v158_v9 = vperm.slane %v155_v5, 1  ;;  %v204_v16 = vld [vmem:[%s570_s1] sm:$0xff]  ;;  %s268_s15 = sshll.u32 %s478_s5, 4  ;;  %s281_s1 = sshll.u32 %s579_s10, 4  ;;  %s269_s15 = int_to_ptr.vmem [resolvable:$true] %s268_s15  ;;  %s282_s1 = int_to_ptr.hbm [resolvable:$true] %s281_s1 }
  0x29   :  { %114 = vmatpush.msra.mxu0 %v85_v31  ;;  %172 = vmatpush.msra.mxu1 %v131_v39  ;;  %v312_v20 = vld [vmem:[%s576_s7] ss:$0 sm:$0xff] }
  0x2a   :  { %192 = vmatpush.msra.mxu2 %v132_v40  ;;  %231 = vmatpush.msra.mxu3 %v218_v57 }
  0x2b   :  { %115 = vmatpush.msra.mxu0 %v84_v34  ;;  %173 = vmatpush.msra.mxu1 %v129_v41 }
  0x2c   :  { %193 = vmatpush.msra.mxu2 %v130_v42  ;;  %232 = vmatpush.msra.mxu3 %v217_v58 }
  0x2d   :  { %116 = vmatpush.msra.mxu0 %v83_v36  ;;  %174 = vmatpush.msra.mxu1 %v127_v43 }
  0x2e   :  { %194 = vmatpush.msra.mxu2 %v128_v44  ;;  %233 = vmatpush.msra.mxu3 %v216_v59 }
  0x2f   :  { %117 = vmatpush.msra.mxu0 %v82_v37  ;;  %175 = vmatpush.msra.mxu1 %v125_v45 }
  0x30   :  { %118 = vmatmul.f32.vlgmr.msra.gmra.mxu0 %v81_v38  ;;  %195 = vmatpush.msra.mxu2 %v126_v46 }
  0x31   :  { %176 = vmatpush.msra.mxu1 %v123_v47  ;;  %234 = vmatpush.msra.mxu3 %v215_v60 }
  0x32   :  { %196 = vmatpush.msra.mxu2 %v124_v48 }
  0x33   :  { %235 = vmatpush.msra.mxu3 %v214_v61 }
  0x35   :  { %236 = vmatpush.msra.mxu3 %v213_v62 }
  0x37   :  { %237 = vmatpush.msra.mxu3 %v212_v63 }
  0x39   :  { %238 = vmatpush.msra.mxu3 %v211_v0 }
  0x3b   :  { %239 = vmatpush.msra.mxu3 %v210_v1 }
  0x3d   :  { %240 = vmatpush.msra.mxu3 %v209_v2 }
  0x3f   :  { %241 = vmatpush.msra.mxu3 %v208_v3 }
  0x41   :  { %242 = vmatpush.msra.mxu3 %v207_v4 }
  0xad   :  { %v119_v54 = vpop.f32.mrf.mxu0 }
  0xae   :  { %v120_v55 = vadd.f32 %v311_v53, %v119_v54 }
  0xb0   :  { %313 = vtanh.f32 %v120_v55 }
  0xb6   :  { %v314_v56 = vpop.eup %313 }
  0xb7   :  { %177 = vmatmul.f32.vlgmr.msra.gmra.mxu1 %v314_v56  ;;  %197 = vmatmul.f32.vlgmr.msra.gmra.mxu2 %v314_v56 }
 0x134   :  { %v178_v7 = vpop.f32.mrf.mxu1 }
 0x135   :  { %v179_v8 = vadd.f32 %v178_v7, %v157_v6 }
 0x137   :  { %248 = vst [vmem:[#allocation9] sm:$0xff] %v179_v8 }
 0x138   :  { %273 = dma.vmem_to_hbm [thread:$0]  %s269_s15, 128, %s271_s18, [#allocation10]  }
 0x13a   :  { %v198_v10 = vpop.f32.mrf.mxu2 }
 0x13b   :  { %v199_v11 = vadd.f32 %v198_v10, %v158_v9 }
 0x13d   :  { %v201_v12 = vmul.f32 0.5, %v199_v11  ;;  %v249_v13 = vmul.f32 1.442695, %v199_v11 }
 0x13f   :  { %v202_v14 = vmul.f32 1.442695, %v201_v12  ;;  %315 = vpow2.f32 %v249_v13 }
 0x141   :  { %317 = vpow2.f32 %v202_v14 }
 0x145   :  { %v316_v15 = vpop.eup %315 }
 0x146   :  { %251 = vst [vmem:[#allocation11] sm:$0xff] %v316_v15 }
 0x147   :  { %v318_v17 = vpop.eup %317  ;;  %284 = dma.vmem_to_hbm [thread:$0]  %s280_s20, 128, %s282_s1, [#allocation10]  }
 0x148   :  { %v205_v18 = vmul.f32 %v318_v17, %v204_v16 }
 0x14a   :  { %v206_v19 = vadd.f32 %v205_v18, %v179_v8 }
 0x14c   :  { %243 = vmatmul.f32.vlgmr.msra.gmra.mxu3 %v206_v19 }
 0x1cf   :  { %v244_v21 = vpop.f32.mrf.mxu3 }
 0x1d0   :  { %v245_v22 = vadd.f32 %v312_v20, %v244_v21 }
 0x1d2   :  { %247 = vst [vmem:[#allocation8] sm:$0xff] %v245_v22 }
 0x1d3   :  { %262 = dma.vmem_to_hbm [thread:$0]  %s258_s26, 128, %s260_s27, [#allocation4]  }
 0x1d4   :  { %467 = dma.done.wait [#allocation4], 128  }
 0x1d5   :  { %468 = vsyncadd [#allocation4], 4294967168 }
 0x1d6   :  { %469 = dma.done.wait [#allocation10], 256  }
 0x1d7   :  { %470 = vsyncadd [#allocation10], 4294967040 }
 0x1d8   :  { %297 = vsyncpa [#allocation3], 1 }
 0x1d9   :  { %298 = vsyncpa [#allocation6], 1 }
 0x1da   :  { %299 = vsyncpa [#allocation4], 1 }
 0x1db   :  { %300 = vsyncpa [#allocation10], 1 }

</bundles_post_ra>
